<compile_context>
chip_gen: v6e
topology: v6e:2x2x1
jax: 0.10.0
libtpu: 0.0.40
codegen_flags: <defaults>
</compile_context>

<pallas_src>
import functools

import jax
import jax.numpy as jnp
from jax.experimental import pallas as pl
from jax.experimental.pallas import tpu as pltpu

LN_EPS = 1e-5  # torch.nn.LayerNorm default


# ----------------------------------------------------------------------------- kernel
def _pwff_decoder_sanm_kernel(x_ref, w1_ref, b1_ref, w2_ref, b2_ref, o_ref):
  # x arrives f32 from HBM; cast to bf16 on the VPU for the MXU.
  x = x_ref[...].astype(jnp.bfloat16)

  # Linear 1: bf16 operands, f32 MXU accumulation, then bias + ReLU.
  h = jnp.dot(x, w1_ref[...], preferred_element_type=jnp.float32)
  h = jnp.maximum(h + b1_ref[...], 0.0)

  # Dropout: identity (eval mode).

  # Single-pass LayerNorm statistics over hidden_units (f32).
  f = h.shape[-1]
  s1 = jnp.sum(h, axis=-1, keepdims=True)
  s2 = jnp.sum(h * h, axis=-1, keepdims=True)
  mean = s1 * (1.0 / f)
  var = jnp.maximum(s2 * (1.0 / f) - mean * mean, 0.0)
  inv = jax.lax.rsqrt(var + LN_EPS)
  hn = (h - mean) * inv  # gamma/beta are folded into W2/b2 at weight-prep time

  # Linear 2: bf16 operands, f32 accumulation, folded post-GEMM bias.
  out = jnp.dot(hn.astype(jnp.bfloat16), w2_ref[...],
                preferred_element_type=jnp.float32)
  out = out + b2_ref[...]
  o_ref[...] = out.astype(o_ref.dtype)


# ----------------------------------------------------------------------------- config helpers
def _round_up(a, m):
  return (a + m - 1) // m * m


def _cdiv(a, b):
  return -(-a // b)


def _tpu_vmem_bytes():
  try:
    return int(pltpu.get_tpu_info().vmem_capacity_bytes)
  except Exception:
    return 64 * 1024 * 1024  # conservative (v7x per-TC size)


def _cores_per_chip():
  try:
    kind = str(getattr(jax.devices()[0], "device_kind", "")).lower()
    if "v7" in kind:
      return 2
  except Exception:
    pass
  return 1


def _footprint_bytes(tile, din, f, dout, out_bytes, wbuf):
  return (2 * tile * din * 4                 # x tile (f32), double-buffered
          + 2 * tile * dout * out_bytes      # out tile, double-buffered
          + wbuf * (din * f + f * dout) * 2  # W1 + W2' (bf16)
          + wbuf * (f + dout) * 4            # b1, b2 (f32)
          + 2 * tile * f * 4                 # f32 h + normalized temporaries
          + tile * f * 2                     # bf16 copy of hn fed to the MXU
          + tile * dout * 4)                 # f32 accumulator of second GEMM


def _choose_config(rows, din, f, dout, out_bytes, tile_m, wbuf):
  vmem_cap = _tpu_vmem_bytes()
  cores = _cores_per_chip()
  budget = int(vmem_cap * 0.7)  # leave headroom for compiler scratch

  if tile_m is None:
    tile_m = 512 if vmem_cap >= (96 << 20) else 256

  max_tile = _round_up(rows, 8)
  tile = min(max(8, _round_up(tile_m, 8)), max_tile)
  while tile > 8 and _footprint_bytes(tile, din, f, dout, out_bytes, wbuf) > budget:
    tile = max(8, _round_up(tile // 2, 8))

  steps = _cdiv(rows, tile)
  if cores >= 2 and steps > 1 and steps % 2 == 1:
    # 2 TensorCores share the "parallel" axis: keep the step count even.
    steps += 1
    tile = _round_up(_cdiv(rows, steps), 8)
    steps = _cdiv(rows, tile)

  need = _footprint_bytes(tile, din, f, dout, out_bytes, wbuf)
  vmem_limit = max(16 << 20, need + (8 << 20))
  vmem_limit = min(vmem_limit, max(16 << 20, vmem_cap - (8 << 20)))
  return tile, steps, vmem_limit


def _const_spec(shape, single_buffer):
  """BlockSpec for a grid-invariant operand (whole array, constant index_map)."""
  index_map = lambda i: (0,) * len(shape)
  if single_buffer:
    try:
      return pl.BlockSpec(shape, index_map, pipeline_mode=pl.Buffered(1))
    except Exception:
      pass
  return pl.BlockSpec(shape, index_map)


# ----------------------------------------------------------------------------- public API
def prepare_params(w1, b1, gamma, beta, w2):
  """One-time weight prep (NOT on the per-call path).

  Weights are expected in (in, out) layout, i.e. the transpose of
  torch.nn.Linear.weight.  Folds LayerNorm's affine (gamma, beta) into the
  second GEMM and stores the GEMM operands in bf16.
  """
  w1f = jnp.asarray(w1, jnp.float32)
  w2f = jnp.asarray(w2, jnp.float32)
  g = jnp.asarray(gamma, jnp.float32)
  b = jnp.asarray(beta, jnp.float32)
  w2g = g[:, None] * w2f            # fold LN scale into W2
  b2 = b @ w2f                      # fold LN shift into a post-GEMM bias
  return dict(
      w1=w1f.astype(jnp.bfloat16),
      b1=jnp.asarray(b1, jnp.float32).reshape(1, -1),
      w2=w2g.astype(jnp.bfloat16),
      b2=b2.reshape(1, -1).astype(jnp.float32),
  )


@functools.partial(jax.jit,
                   static_argnames=("tile_m", "out_dtype", "single_buffer_params"))
def pwff_decoder_sanm_forward(x, w1, b1, w2, b2, *, tile_m=None, out_dtype=None,
                              single_buffer_params=True):
  """x: (B, T, idim) f32/bf16 -> (B, T, odim).  w1/b1/w2/b2 from prepare_params."""
  B, T, Din = x.shape
  F = w1.shape[1]          # hidden_units
  Dout = w2.shape[1]       # idim (or adim)
  rows = B * T
  out_dtype = x.dtype if out_dtype is None else out_dtype
  out_bytes = jnp.dtype(out_dtype).itemsize
  x_bytes = jnp.dtype(x.dtype).itemsize

  wbuf = 1 if single_buffer_params else 2
  tile, steps, vmem_limit = _choose_config(rows, Din, F, Dout, out_bytes, tile_m, wbuf)

  x2 = x.reshape(rows, Din)  # no dtype cast, no padding: single HBM pass over x

  cost = pl.CostEstimate(
      flops=2 * rows * Din * F + 2 * rows * F * Dout + 10 * rows * F,
      transcendentals=rows,  # one rsqrt per row
      bytes_accessed=(rows * Din * x_bytes + rows * Dout * out_bytes
                      + (Din * F + F * Dout) * 2 + (F + Dout) * 4),
  )

  out2 = pl.pallas_call(
      _pwff_decoder_sanm_kernel,
      out_shape=jax.ShapeDtypeStruct((rows, Dout), out_dtype),
      grid_spec=pltpu.PrefetchScalarGridSpec(
          num_scalar_prefetch=0,
          grid=(steps,),
          in_specs=[
              pl.BlockSpec((tile, Din), lambda i: (i, 0)),      # x rows (ragged last block OK)
              _const_spec((Din, F), single_buffer_params),      # W1 (bf16)
              _const_spec((1, F), single_buffer_params),        # b1 (f32)
              _const_spec((F, Dout), single_buffer_params),     # W2' = gamma*W2 (bf16)
              _const_spec((1, Dout), single_buffer_params),     # b2 = beta@W2 (f32)
          ],
          out_specs=pl.BlockSpec((tile, Dout), lambda i: (i, 0)),
      ),
      compiler_params=pltpu.CompilerParams(
          dimension_semantics=("parallel",),
          vmem_limit_bytes=int(vmem_limit)),
      cost_estimate=cost,
  )(x2, w1, b1, w2, b2)

  return out2.reshape(B, T, Dout)


# ----------------------------------------------------------------------------- reference & demo
def _reference(x, w1, b1, gamma, beta, w2):
  """Plain-JAX reference applying the same bf16-operand / f32-accumulation policy.

  Note: bf16 GEMM operands deviate slightly from PyTorch's pure-f32 math
  (acceptable for inference; tolerance below accounts for it).
  """
  xb = x.reshape(-1, x.shape[-1]).astype(jnp.bfloat16).astype(jnp.float32)
  w1f = w1.astype(jnp.bfloat16).astype(jnp.float32)
  h = jnp.maximum(xb @ w1f + b1, 0.0)
  mean = jnp.mean(h, axis=-1, keepdims=True)
  var = jnp.maximum(jnp.mean(h * h, axis=-1, keepdims=True) - mean * mean, 0.0)
  hn = (h - mean) * jax.lax.rsqrt(var + LN_EPS)
  w2g = (gamma[:, None] * w2).astype(jnp.bfloat16).astype(jnp.float32)
  b2 = beta @ w2
  out = hn.astype(jnp.bfloat16).astype(jnp.float32) @ w2g + b2
  return out.reshape(x.shape[0], x.shape[1], -1).astype(x.dtype)


if __name__ == "__main__":
  # Small shapes consistent with the module: (B, T, idim); adim=None -> odim == idim.
  B, T, IDIM, HUNITS = 2, 16, 128, 256

  key = jax.random.PRNGKey(0)
  kx, kw1, kb1, kg, kb, kw2 = jax.random.split(key, 6)

  x = jax.random.normal(kx, (B, T, IDIM), dtype=jnp.float32)
  # (in, out) layout == transpose of torch.nn.Linear.weight.
  w1 = jax.random.normal(kw1, (IDIM, HUNITS), dtype=jnp.float32) / jnp.sqrt(IDIM)
  b1 = 0.01 * jax.random.normal(kb1, (HUNITS,), dtype=jnp.float32)
  gamma = 1.0 + 0.01 * jax.random.normal(kg, (HUNITS,), dtype=jnp.float32)
  beta = 0.01 * jax.random.normal(kb, (HUNITS,), dtype=jnp.float32)
  w2 = jax.random.normal(kw2, (HUNITS, IDIM), dtype=jnp.float32) / jnp.sqrt(HUNITS)

  params = prepare_params(w1, b1, gamma, beta, w2)  # one-time weight prep

  try:
    out = pwff_decoder_sanm_forward(x, params["w1"], params["b1"], params["w2"],
                                    params["b2"], single_buffer_params=True)
    out = jax.block_until_ready(out)
  except Exception:
    # Fall back to default double-buffered parameter blocks if this jax build
    # rejects pl.Buffered(1) single-buffering at lowering time.
    out = pwff_decoder_sanm_forward(x, params["w1"], params["b1"], params["w2"],
                                    params["b2"], single_buffer_params=False)
    out = jax.block_until_ready(out)

  ref = _reference(x, w1, b1, gamma, beta, w2)
  assert out.shape == (B, T, IDIM)
  err = float(jnp.max(jnp.abs(out.astype(jnp.float32) - ref.astype(jnp.float32))))
  assert err < 2e-2, err
  print("KERNEL_OK")
</pallas_src>

<mosaic_0001>
module attributes {stable_mosaic.version = 11 : i64} {
  func.func @_pwff_decoder_sanm_kernel(%arg0: i32, %arg1: memref<32x128xf32, #tpu.memory_space<vmem>>, %arg2: memref<128x256xbf16, #tpu.memory_space<vmem>>, %arg3: memref<1x256xf32, #tpu.memory_space<vmem>>, %arg4: memref<256x128xbf16, #tpu.memory_space<vmem>>, %arg5: memref<1x128xf32, #tpu.memory_space<vmem>>, %arg6: memref<32x128xf32, #tpu.memory_space<vmem>>) attributes {dimension_semantics = [#tpu.dimension_semantics<parallel>], iteration_bounds = array<i64: 1>, scalar_prefetch = 0 : i64, scratch_operands = 0 : i64, tpu.core_type = #tpu.core_type<tc>, window_params = [{transform_indices = @transform_0, window_bounds = array<i64: 32, 128>}, {pipeline_mode = #tpu.pipeline_mode<synchronous>, transform_indices = @transform_1, window_bounds = array<i64: 128, 256>}, {pipeline_mode = #tpu.pipeline_mode<synchronous>, transform_indices = @transform_2, window_bounds = array<i64: 1, 256>}, {pipeline_mode = #tpu.pipeline_mode<synchronous>, transform_indices = @transform_3, window_bounds = array<i64: 256, 128>}, {pipeline_mode = #tpu.pipeline_mode<synchronous>, transform_indices = @transform_4, window_bounds = array<i64: 1, 128>}, {transform_indices = @transform_5, window_bounds = array<i64: 32, 128>}]} {
    %c0 = arith.constant 0 : index
    %c0_0 = arith.constant 0 : index
    %0 = vector.load %arg1[%c0, %c0_0] : memref<32x128xf32, #tpu.memory_space<vmem>>, vector<32x128xf32>
    %1 = arith.truncf %0 : vector<32x128xf32> to vector<32x128xbf16>
    %c0_1 = arith.constant 0 : index
    %c0_2 = arith.constant 0 : index
    %2 = vector.load %arg2[%c0_1, %c0_2] : memref<128x256xbf16, #tpu.memory_space<vmem>>, vector<128x256xbf16>
    %cst = arith.constant dense<0.000000e+00> : vector<32x256xf32>
    %3 = tpu.matmul %1, %2, %cst {dimension_numbers = #tpu.dot_dimension_numbers<[1], [0], [0], [1], [0, 0, 1, 1], [], []>} : vector<32x128xbf16>, vector<128x256xbf16>, vector<32x256xf32> -> vector<32x256xf32>
    %c0_3 = arith.constant 0 : index
    %c0_4 = arith.constant 0 : index
    %4 = vector.load %arg3[%c0_3, %c0_4] : memref<1x256xf32, #tpu.memory_space<vmem>>, vector<1x256xf32>
    %5 = vector.broadcast %4 : vector<1x256xf32> to vector<32x256xf32>
    %6 = arith.addf %3, %5 : vector<32x256xf32>
    %cst_5 = arith.constant 0.000000e+00 : f32
    %7 = vector.broadcast %cst_5 : f32 to vector<32x256xf32>
    %8 = arith.maximumf %6, %7 : vector<32x256xf32>
    %cst_6 = arith.constant dense<0.000000e+00> : vector<32xf32>
    %9 = vector.multi_reduction <add>, %8, %cst_6 [1] : vector<32x256xf32> to vector<32xf32>
    %10 = vector.shape_cast %9 : vector<32xf32> to vector<32x1xf32>
    %11 = arith.mulf %8, %8 : vector<32x256xf32>
    %cst_7 = arith.constant dense<0.000000e+00> : vector<32xf32>
    %12 = vector.multi_reduction <add>, %11, %cst_7 [1] : vector<32x256xf32> to vector<32xf32>
    %13 = vector.shape_cast %12 : vector<32xf32> to vector<32x1xf32>
    %cst_8 = arith.constant 3.906250e-03 : f32
    %14 = vector.broadcast %cst_8 : f32 to vector<32x1xf32>
    %15 = arith.mulf %10, %14 : vector<32x1xf32>
    %cst_9 = arith.constant 3.906250e-03 : f32
    %16 = vector.broadcast %cst_9 : f32 to vector<32x1xf32>
    %17 = arith.mulf %13, %16 : vector<32x1xf32>
    %18 = arith.mulf %15, %15 : vector<32x1xf32>
    %19 = arith.subf %17, %18 : vector<32x1xf32>
    %cst_10 = arith.constant 0.000000e+00 : f32
    %20 = vector.broadcast %cst_10 : f32 to vector<32x1xf32>
    %21 = arith.maximumf %19, %20 : vector<32x1xf32>
    %cst_11 = arith.constant 9.99999974E-6 : f32
    %22 = vector.broadcast %cst_11 : f32 to vector<32x1xf32>
    %23 = arith.addf %21, %22 : vector<32x1xf32>
    %24 = math.rsqrt %23 : vector<32x1xf32>
    %25 = vector.broadcast %15 : vector<32x1xf32> to vector<32x256xf32>
    %26 = arith.subf %8, %25 : vector<32x256xf32>
    %27 = vector.broadcast %24 : vector<32x1xf32> to vector<32x256xf32>
    %28 = arith.mulf %26, %27 : vector<32x256xf32>
    %29 = arith.truncf %28 : vector<32x256xf32> to vector<32x256xbf16>
    %c0_12 = arith.constant 0 : index
    %c0_13 = arith.constant 0 : index
    %30 = vector.load %arg4[%c0_12, %c0_13] : memref<256x128xbf16, #tpu.memory_space<vmem>>, vector<256x128xbf16>
    %cst_14 = arith.constant dense<0.000000e+00> : vector<32x128xf32>
    %31 = tpu.matmul %29, %30, %cst_14 {dimension_numbers = #tpu.dot_dimension_numbers<[1], [0], [0], [1], [0, 0, 1, 1], [], []>} : vector<32x256xbf16>, vector<256x128xbf16>, vector<32x128xf32> -> vector<32x128xf32>
    %c0_15 = arith.constant 0 : index
    %c0_16 = arith.constant 0 : index
    %32 = vector.load %arg5[%c0_15, %c0_16] : memref<1x128xf32, #tpu.memory_space<vmem>>, vector<1x128xf32>
    %33 = vector.broadcast %32 : vector<1x128xf32> to vector<32x128xf32>
    %34 = arith.addf %31, %33 : vector<32x128xf32>
    %c0_17 = arith.constant 0 : index
    %c0_18 = arith.constant 0 : index
    %35 = vector.load %arg6[%c0_17, %c0_18] : memref<32x128xf32, #tpu.memory_space<vmem>>, vector<32x128xf32>
    tpu.vector_store %arg6[%c0_17, %c0_18], %34 {strides = array<i32>} : memref<32x128xf32, #tpu.memory_space<vmem>>, vector<32x128xf32>,
    return
  }
  func.func @transform_0(%arg0: i32) -> (i32, i32) {
    %c0_i32 = arith.constant 0 : i32
    %c0_i32_0 = arith.constant 0 : i32
    return %arg0, %c0_i32 : i32, i32
  }
  func.func @transform_1(%arg0: i32) -> (i32, i32) {
    %c0_i32 = arith.constant 0 : i32
    %c0_i32_0 = arith.constant 0 : i32
    %c0_i32_1 = arith.constant 0 : i32
    return %c0_i32, %c0_i32_0 : i32, i32
  }
  func.func @transform_2(%arg0: i32) -> (i32, i32) {
    %c0_i32 = arith.constant 0 : i32
    %c0_i32_0 = arith.constant 0 : i32
    %c0_i32_1 = arith.constant 0 : i32
    return %c0_i32, %c0_i32_0 : i32, i32
  }
  func.func @transform_3(%arg0: i32) -> (i32, i32) {
    %c0_i32 = arith.constant 0 : i32
    %c0_i32_0 = arith.constant 0 : i32
    %c0_i32_1 = arith.constant 0 : i32
    return %c0_i32, %c0_i32_0 : i32, i32
  }
  func.func @transform_4(%arg0: i32) -> (i32, i32) {
    %c0_i32 = arith.constant 0 : i32
    %c0_i32_0 = arith.constant 0 : i32
    %c0_i32_1 = arith.constant 0 : i32
    return %c0_i32, %c0_i32_0 : i32, i32
  }
  func.func @transform_5(%arg0: i32) -> (i32, i32) {
    %c0_i32 = arith.constant 0 : i32
    %c0_i32_0 = arith.constant 0 : i32
    return %arg0, %c0_i32 : i32, i32
  }
}

module attributes {stable_mosaic.version = 11 : i64} {
  func.func @_pwff_decoder_sanm_kernel(%arg0: i32, %arg1: memref<32x128xf32, #tpu.memory_space<vmem>>, %arg2: memref<128x256xbf16, #tpu.memory_space<vmem>>, %arg3: memref<1x256xf32, #tpu.memory_space<vmem>>, %arg4: memref<256x128xbf16, #tpu.memory_space<vmem>>, %arg5: memref<1x128xf32, #tpu.memory_space<vmem>>, %arg6: memref<32x128xf32, #tpu.memory_space<vmem>>) attributes {dimension_semantics = [#tpu.dimension_semantics<parallel>], iteration_bounds = array<i64: 1>, scalar_prefetch = 0 : i64, scratch_operands = 0 : i64, tpu.core_type = #tpu.core_type<tc>, window_params = [{transform_indices = @transform_0, window_bounds = array<i64: 32, 128>}, {pipeline_mode = #tpu.pipeline_mode<synchronous>, transform_indices = @transform_1, window_bounds = array<i64: 128, 256>}, {pipeline_mode = #tpu.pipeline_mode<synchronous>, transform_indices = @transform_2, window_bounds = array<i64: 1, 256>}, {pipeline_mode = #tpu.pipeline_mode<synchronous>, transform_indices = @transform_3, window_bounds = array<i64: 256, 128>}, {pipeline_mode = #tpu.pipeline_mode<synchronous>, transform_indices = @transform_4, window_bounds = array<i64: 1, 128>}, {transform_indices = @transform_5, window_bounds = array<i64: 32, 128>}]} {
    %c0 = arith.constant 0 : index
    %c0_0 = arith.constant 0 : index
    %0 = vector.load %arg1[%c0, %c0_0] : memref<32x128xf32, #tpu.memory_space<vmem>>, vector<32x128xf32>
    %1 = arith.truncf %0 : vector<32x128xf32> to vector<32x128xbf16>
    %c0_1 = arith.constant 0 : index
    %c0_2 = arith.constant 0 : index
    %2 = vector.load %arg2[%c0_1, %c0_2] : memref<128x256xbf16, #tpu.memory_space<vmem>>, vector<128x256xbf16>
    %cst = arith.constant dense<0.000000e+00> : vector<32x256xf32>
    %3 = tpu.matmul %1, %2, %cst {dimension_numbers = #tpu.dot_dimension_numbers<[1], [0], [0], [1], [0, 0, 1, 1], [], []>} : vector<32x128xbf16>, vector<128x256xbf16>, vector<32x256xf32> -> vector<32x256xf32>
    %c0_3 = arith.constant 0 : index
    %c0_4 = arith.constant 0 : index
    %4 = vector.load %arg3[%c0_3, %c0_4] : memref<1x256xf32, #tpu.memory_space<vmem>>, vector<1x256xf32>
    %5 = vector.broadcast %4 : vector<1x256xf32> to vector<32x256xf32>
    %6 = arith.addf %3, %5 : vector<32x256xf32>
    %cst_5 = arith.constant 0.000000e+00 : f32
    %7 = vector.broadcast %cst_5 : f32 to vector<32x256xf32>
    %8 = arith.maximumf %6, %7 : vector<32x256xf32>
    %cst_6 = arith.constant dense<0.000000e+00> : vector<32xf32>
    %9 = vector.multi_reduction <add>, %8, %cst_6 [1] : vector<32x256xf32> to vector<32xf32>
    %10 = vector.shape_cast %9 : vector<32xf32> to vector<32x1xf32>
    %11 = arith.mulf %8, %8 : vector<32x256xf32>
    %cst_7 = arith.constant dense<0.000000e+00> : vector<32xf32>
    %12 = vector.multi_reduction <add>, %11, %cst_7 [1] : vector<32x256xf32> to vector<32xf32>
    %13 = vector.shape_cast %12 : vector<32xf32> to vector<32x1xf32>
    %cst_8 = arith.constant 3.906250e-03 : f32
    %14 = vector.broadcast %cst_8 : f32 to vector<32x1xf32>
    %15 = arith.mulf %10, %14 : vector<32x1xf32>
    %cst_9 = arith.constant 3.906250e-03 : f32
    %16 = vector.broadcast %cst_9 : f32 to vector<32x1xf32>
    %17 = arith.mulf %13, %16 : vector<32x1xf32>
    %18 = arith.mulf %15, %15 : vector<32x1xf32>
    %19 = arith.subf %17, %18 : vector<32x1xf32>
    %cst_10 = arith.constant 0.000000e+00 : f32
    %20 = vector.broadcast %cst_10 : f32 to vector<32x1xf32>
    %21 = arith.maximumf %19, %20 : vector<32x1xf32>
    %cst_11 = arith.constant 9.99999974E-6 : f32
    %22 = vector.broadcast %cst_11 : f32 to vector<32x1xf32>
    %23 = arith.addf %21, %22 : vector<32x1xf32>
    %24 = math.rsqrt %23 : vector<32x1xf32>
    %25 = vector.broadcast %15 : vector<32x1xf32> to vector<32x256xf32>
    %26 = arith.subf %8, %25 : vector<32x256xf32>
    %27 = vector.broadcast %24 : vector<32x1xf32> to vector<32x256xf32>
    %28 = arith.mulf %26, %27 : vector<32x256xf32>
    %29 = arith.truncf %28 : vector<32x256xf32> to vector<32x256xbf16>
    %c0_12 = arith.constant 0 : index
    %c0_13 = arith.constant 0 : index
    %30 = vector.load %arg4[%c0_12, %c0_13] : memref<256x128xbf16, #tpu.memory_space<vmem>>, vector<256x128xbf16>
    %cst_14 = arith.constant dense<0.000000e+00> : vector<32x128xf32>
    %31 = tpu.matmul %29, %30, %cst_14 {dimension_numbers = #tpu.dot_dimension_numbers<[1], [0], [0], [1], [0, 0, 1, 1], [], []>} : vector<32x256xbf16>, vector<256x128xbf16>, vector<32x128xf32> -> vector<32x128xf32>
    %c0_15 = arith.constant 0 : index
    %c0_16 = arith.constant 0 : index
    %32 = vector.load %arg5[%c0_15, %c0_16] : memref<1x128xf32, #tpu.memory_space<vmem>>, vector<1x128xf32>
    %33 = vector.broadcast %32 : vector<1x128xf32> to vector<32x128xf32>
    %34 = arith.addf %31, %33 : vector<32x128xf32>
    %c0_17 = arith.constant 0 : index
    %c0_18 = arith.constant 0 : index
    %35 = vector.load %arg6[%c0_17, %c0_18] : memref<32x128xf32, #tpu.memory_space<vmem>>, vector<32x128xf32>
    tpu.vector_store %arg6[%c0_17, %c0_18], %34 {strides = array<i32>} : memref<32x128xf32, #tpu.memory_space<vmem>>, vector<32x128xf32>,
    return
  }
  func.func @transform_0(%arg0: i32) -> (i32, i32) {
    %c0_i32 = arith.constant 0 : i32
    %c0_i32_0 = arith.constant 0 : i32
    return %arg0, %c0_i32 : i32, i32
  }
  func.func @transform_1(%arg0: i32) -> (i32, i32) {
    %c0_i32 = arith.constant 0 : i32
    %c0_i32_0 = arith.constant 0 : i32
    %c0_i32_1 = arith.constant 0 : i32
    return %c0_i32, %c0_i32_0 : i32, i32
  }
  func.func @transform_2(%arg0: i32) -> (i32, i32) {
    %c0_i32 = arith.constant 0 : i32
    %c0_i32_0 = arith.constant 0 : i32
    %c0_i32_1 = arith.constant 0 : i32
    return %c0_i32, %c0_i32_0 : i32, i32
  }
  func.func @transform_3(%arg0: i32) -> (i32, i32) {
    %c0_i32 = arith.constant 0 : i32
    %c0_i32_0 = arith.constant 0 : i32
    %c0_i32_1 = arith.constant 0 : i32
    return %c0_i32, %c0_i32_0 : i32, i32
  }
  func.func @transform_4(%arg0: i32) -> (i32, i32) {
    %c0_i32 = arith.constant 0 : i32
    %c0_i32_0 = arith.constant 0 : i32
    %c0_i32_1 = arith.constant 0 : i32
    return %c0_i32, %c0_i32_0 : i32, i32
  }
  func.func @transform_5(%arg0: i32) -> (i32, i32) {
    %c0_i32 = arith.constant 0 : i32
    %c0_i32_0 = arith.constant 0 : i32
    return %arg0, %c0_i32 : i32, i32
  }
}

</mosaic_0001>

<bundles_post_ra>
// kernel: pwff_decoder_sanm_forward.1
= control target key start
LH: loop header
LB: loop body
LE: loop exit
PB: predicated region body
PF: predicated region fallthrough
CT: control target
= control target key end

     0   :  { %10 = vsyncpa [#allocation3], 0  ;;  %s842_s0 = inlined_call_operand.hbm [shape: f32[32,128], index: 0, kind: input, shape index: {}]   ;;  %s843_s1 = inlined_call_operand.hbm [shape: bf16[128,256], index: 1, kind: input, shape index: {}]   ;;  %s844_s2 = inlined_call_operand.vmem [shape: f32[1,256], index: 2, kind: input, shape index: {}]   ;;  %s845_s3 = inlined_call_operand.hbm [shape: bf16[256,128], index: 3, kind: input, shape index: {}]   ;;  %s846_s4 = inlined_call_operand.vmem [shape: f32[1,128], index: 4, kind: input, shape index: {}]   ;;  %s847_s5 = inlined_call_operand.hbm [shape: f32[32,128], index: 5, kind: output, shape index: {}]  }
   0x1   :  { %11 = vsyncpa [#allocation6], 0 }
   0x2   :  { %12 = vsyncpa [#allocation4], 0  ;;  %s728_s18 = smov [#allocation5]   ;;  %s729_s20 = smov [#allocation2]  }
   0x3   :  { %s30_s19 = sshll.u32 %s728_s18, 4  ;;  %s18_s21 = sshll.u32 %s729_s20, 4  ;;  %s31_s19 = int_to_ptr.vmem [resolvable:$true] %s30_s19  ;;  %s19_s21 = int_to_ptr.vmem [resolvable:$true] %s18_s21 }
   0x4   :  { %s650_s22 = scalar_lea.vmem %s31_s19, 2048  ;;  %p655_p1 = scmp.lt.s32.totalorder %s31_s19, %s31_s19 }
   0x5   :  { %p651_p0 = scmp.ne.s32.totalorder %s31_s19, %s650_s22  ;;  %p656_p2 = scmp.lt.s32.totalorder %s650_s22, %s650_s22 }
   0x7   :  { %p657_p3 = por %p656_p2, %p655_p1 }
   0x9   :  { %p658_p4 = pnand %p657_p3, %p651_p0 }
   0xb   :  { %661 = shalt.err (!%p658_p4)
}
   0xc   :  { %s730_s23 = smov 128   ;;  %s731_s24 = smov 8  }
   0xd   :  { %36 = dma.hbm_to_vmem [thread:$0]  %s843_s1, 2048, %s31_s19, [#allocation6], %s730_s23, %s730_s23, %s731_s24  }
   0xe   :  { %s670_s27 = scalar_lea.vmem %s19_s21, 512  ;;  %p675_p6 = scmp.lt.s32.totalorder %s19_s21, %s19_s21 }
   0xf   :  { %p671_p5 = scmp.ne.s32.totalorder %s19_s21, %s670_s27  ;;  %p676_p7 = scmp.lt.s32.totalorder %s670_s27, %s670_s27 }
  0x11   :  { %p677_p8 = por %p676_p7, %p675_p6 }
  0x13   :  { %p678_p9 = pnand %p677_p8, %p671_p5 }
  0x15   :  { %681 = shalt.err (!%p678_p9)
}
  0x16   :  { %24 = dma.hbm_to_vmem [thread:$0]  %s842_s0, 512, %s19_s21, [#allocation3], %s730_s23, %s730_s23, %s731_s24  }
  0x17   :  { %s732_s30 = smov [#allocation7]  }
  0x18   :  { %s44_s6 = sshll.u32 %s732_s30, 4  ;;  %s45_s6 = int_to_ptr.vmem [resolvable:$true] %s44_s6 }
  0x19   :  { %s690_s7 = scalar_lea.vmem %s45_s6, 2048  ;;  %p695_p11 = scmp.lt.s32.totalorder %s45_s6, %s45_s6 }
  0x1a   :  { %p691_p10 = scmp.ne.s32.totalorder %s45_s6, %s690_s7  ;;  %p696_p12 = scmp.lt.s32.totalorder %s690_s7, %s690_s7 }
  0x1c   :  { %p697_p13 = por %p696_p12, %p695_p11 }
  0x1e   :  { %p698_p0 = pnand %p697_p13, %p691_p10 }
  0x20   :  { %701 = shalt.err (!%p698_p0)
}
  0x21   :  { %s733_s1 = smov 64   ;;  %s734_s8 = smov 4  }
  0x22   :  { %50 = dma.hbm_to_vmem [thread:$0]  %s845_s3, 2048, %s45_s6, [#allocation6], %s733_s1, %s733_s1, %s734_s8  }
  0x23   :  { %722 = dma.done.wait [#allocation3], 512  }
  0x24   :  { %723 = vsyncadd [#allocation3], 4294966784 }
  0x25   :  { %724 = dma.done.wait [#allocation6], 4096  }
  0x26   :  { %725 = vsyncadd [#allocation6], 4294963200  ;;  %v735_v0 = vmov 0   ;;  %v594_v1 = vld [vmem:[#allocation5 + $0x74] ss:$8 sps:$4 sm:$0xff]   ;;  %v63_v17 = vld [vmem:[#allocation2] sm:$0xff]  ;;  %v87_v23 = vlaneseq }
  0x27   :  { %209 = vmatprep.mubr.bf16.mxu0 %v735_v0  ;;  %v596_v2 = vld [vmem:[#allocation5 + $0x70] ss:$8 sps:$4 sm:$0xff]   ;;  %177 = vmatprep.subr.bf16.mxu0 %v594_v1  ;;  %v597_v3 = vld [vmem:[#allocation5 + $0x64] ss:$8 sps:$4 sm:$0xff]   ;;  %v599_v4 = vld [vmem:[#allocation5 + $0x60] ss:$8 sps:$4 sm:$0xff]  }
  0x28   :  { %178 = vmatpush1.bf16.msra.mxu0 %v596_v2  ;;  %v600_v5 = vld [vmem:[#allocation5 + $0x54] ss:$8 sps:$4 sm:$0xff]   ;;  %v602_v6 = vld [vmem:[#allocation5 + $0x50] ss:$8 sps:$4 sm:$0xff]   ;;  %v603_v7 = vld [vmem:[#allocation5 + $0x44] ss:$8 sps:$4 sm:$0xff]  }
  0x29   :  { %179 = vmatprep.subr.bf16.mxu0 %v597_v3  ;;  %v605_v8 = vld [vmem:[#allocation5 + $0x40] ss:$8 sps:$4 sm:$0xff]   ;;  %v606_v9 = vld [vmem:[#allocation5 + $0x34] ss:$8 sps:$4 sm:$0xff]   ;;  %v608_v10 = vld [vmem:[#allocation5 + $0x30] ss:$8 sps:$4 sm:$0xff]  }
  0x2a   :  { %v609_v11 = vld [vmem:[#allocation5 + $0x24] ss:$8 sps:$4 sm:$0xff]   ;;  %v611_v12 = vld [vmem:[#allocation5 + $0x20] ss:$8 sps:$4 sm:$0xff]   ;;  %v612_v13 = vld [vmem:[#allocation5 + $0x14] ss:$8 sps:$4 sm:$0xff]  }
  0x2b   :  { %v614_v14 = vld [vmem:[#allocation5 + $0x10] ss:$8 sps:$4 sm:$0xff]   ;;  %v615_v15 = vld [vmem:[#allocation5 + $0x4] ss:$8 sps:$4 sm:$0xff]   ;;  %v617_v16 = vld [vmem:[#allocation5] ss:$8 sps:$4 sm:$0xff]  }
  0x2c   :  { %180 = vmatpush1.bf16.msra.mxu0 %v599_v4  ;;  %v64_v18 = vld [vmem:[#allocation2 + $0x8] sm:$0xff]  ;;  %v65_v20 = vld [vmem:[#allocation2 + $0x10] sm:$0xff]  ;;  %v66_v21 = vld [vmem:[#allocation2 + $0x18] sm:$0xff]  ;;  %v88_v24 = vshrl.u32 %v87_v23, 7  ;;  %s736_s12 = smov [#allocation8]  }
  0x2d   :  { %181 = vmatprep.subr.bf16.mxu0 %v600_v5  ;;  %v67_v19 = vpack.c.bf16 %v64_v18, %v63_v17  ;;  %v68_v22 = vpack.c.bf16 %v66_v21, %v65_v20  ;;  %v85_v26 = vld [vmem:[%s844_s2] sm:$0x3]  ;;  %v618_v1 = vld [vmem:[#allocation7 + $0x78] sm:$0xff]   ;;  %v629_v17 = vld [vmem:[#allocation7 + $0x10] sm:$0xff]   ;;  %s511_s13 = sshll.u32 %s736_s12, 4  ;;  %s512_s13 = int_to_ptr.vmem [resolvable:$true] %s511_s13 }
  0x2e   :  { %v89_v25 = vsub.s32 0, %v88_v24  ;;  %v93_v27 = vsub.s32 1, %v88_v24  ;;  %v619_v5 = vld [vmem:[#allocation7 + $0x38] sm:$0xff]   ;;  %557 = vmatprep.subr.bf16.mxu1 %v618_v1  ;;  %v630_v18 = vld [vmem:[#allocation7 + $0x48] sm:$0xff]   ;;  %v632_v20 = vld [vmem:[#allocation7 + $0x40] sm:$0xff]   ;;  %p707_p2 = scmp.lt.s32.totalorder %s512_s13, %s512_s13 }
  0x2f   :  { %558 = vmatpush3.bf16.msra.mxu1 %v619_v5  ;;  %v633_v21 = vld [vmem:[#allocation7] sm:$0xff]  }
  0x30   :  { %182 = vmatpush1.bf16.msra.mxu0 %v602_v6  ;;  %v90_v28 = vrot.slane %v85_v26, %v89_v25  ;;  %v94_v29 = vrot.slane %v85_v26, %v93_v27 }
  0x31   :  { %183 = vmatprep.subr.bf16.mxu0 %v603_v7  ;;  %v620_v7 = vld [vmem:[#allocation7 + $0x70] sm:$0xff]  }
  0x32   :  { %559 = vmatprep.subr.bf16.mxu1 %v620_v7 }
  0x34   :  { %184 = vmatpush1.bf16.msra.mxu0 %v605_v8 }
  0x35   :  { %185 = vmatprep.subr.bf16.mxu0 %v606_v9  ;;  %v621_v9 = vld [vmem:[#allocation7 + $0x30] sm:$0xff]  }
  0x36   :  { %560 = vmatpush3.bf16.msra.mxu1 %v621_v9 }
  0x38   :  { %186 = vmatpush1.bf16.msra.mxu0 %v608_v10  ;;  %v622_v10 = vld [vmem:[#allocation7 + $0x68] sm:$0xff]  }
  0x39   :  { %187 = vmatprep.subr.bf16.mxu0 %v609_v11  ;;  %v623_v11 = vld [vmem:[#allocation7 + $0x28] sm:$0xff]   ;;  %561 = vmatprep.subr.bf16.mxu1 %v622_v10 }
  0x3a   :  { %562 = vmatpush3.bf16.msra.mxu1 %v623_v11 }
  0x3c   :  { %188 = vmatpush1.bf16.msra.mxu0 %v611_v12  ;;  %v624_v12 = vld [vmem:[#allocation7 + $0x60] sm:$0xff]  }
  0x3d   :  { %189 = vmatprep.subr.bf16.mxu0 %v612_v13  ;;  %v625_v13 = vld [vmem:[#allocation7 + $0x20] sm:$0xff]   ;;  %563 = vmatprep.subr.bf16.mxu1 %v624_v12 }
  0x3e   :  { %564 = vmatpush3.bf16.msra.mxu1 %v625_v13 }
  0x40   :  { %190 = vmatpush1.bf16.msra.mxu0 %v614_v14  ;;  %v626_v14 = vld [vmem:[#allocation7 + $0x58] sm:$0xff]  }
  0x41   :  { %191 = vmatprep.subr.bf16.mxu0 %v615_v15  ;;  %v627_v15 = vld [vmem:[#allocation7 + $0x18] sm:$0xff]   ;;  %565 = vmatprep.subr.bf16.mxu1 %v626_v14 }
  0x42   :  { %566 = vmatpush3.bf16.msra.mxu1 %v627_v15 }
  0x44   :  { %192 = vmatpush1.bf16.msra.mxu0 %v617_v16  ;;  %v628_v16 = vld [vmem:[#allocation7 + $0x50] sm:$0xff]  }
  0x45   :  { %567 = vmatprep.subr.bf16.mxu1 %v628_v16 }
  0x46   :  { %568 = vmatpush3.bf16.msra.mxu1 %v629_v17 }
  0x47   :  { %210 = vmatmul.mubr.bf16.vlgmr.msra.gmra.mxu0 %v67_v19  ;;  %v631_v19 = vld [vmem:[#allocation7 + $0x8] sm:$0xff]   ;;  %569 = vmatprep.subr.bf16.mxu1 %v630_v18 }
  0x48   :  { %219 = vmatprep.mubr.bf16.mxu0 %v735_v0 }
  0x4a   :  { %570 = vmatpush3.bf16.msra.mxu1 %v631_v19 }
  0x4b   :  { %571 = vmatprep.subr.bf16.mxu1 %v632_v20 }
  0x4e   :  { %572 = vmatpush3.bf16.msra.mxu1 %v633_v21 }
  0x4f   :  { %220 = vmatmul.mubr.bf16.gmra.mxu0 %v68_v22 }
 0x107   :  { %v211_v30 = vpop.f32.mrf.mxu0 }
 0x108   :  { %v212_v31 = vadd.f32 %v211_v30, %v90_v28 }
 0x109   :  { %v213_v32 = vpop.f32.mrf.mxu0 }
 0x10a   :  { %v785_v33 = vmax.f32 %v212_v31, 0.0  ;;  %v214_v34 = vadd.f32 %v213_v32, %v94_v29 }
 0x10b   :  { %v215_v35 = vpop.f32.mrf.mxu0 }
 0x10c   :  { %v787_v36 = vmax.f32 %v214_v34, 0.0  ;;  %v216_v37 = vadd.f32 %v215_v35, %v90_v28  ;;  %v250_v39 = vmul.f32 %v785_v33, %v785_v33 }
 0x10d   :  { %v217_v38 = vpop.f32.mrf.mxu0 }
 0x10e   :  { %v791_v40 = vmax.f32 %v216_v37, 0.0  ;;  %v218_v41 = vadd.f32 %v217_v38, %v94_v29  ;;  %v238_v42 = vadd.f32 %v787_v36, %v785_v33  ;;  %v251_v43 = vmul.f32 %v787_v36, %v787_v36 }
 0x10f   :  { %v221_v44 = vpop.f32.mrf.mxu0 }
 0x110   :  { %v797_v45 = vmax.f32 %v218_v41, 0.0  ;;  %v222_v46 = vadd.f32 %v221_v44, %v90_v28  ;;  %239 = vadd.xlane.f32.xlu0 %v238_v42  ;;  %v258_v47 = vadd.f32 %v251_v43, %v250_v39  ;;  %v252_v51 = vmul.f32 %v791_v40, %v791_v40 }
 0x111   :  { %v223_v48 = vpop.f32.mrf.mxu0 }
 0x112   :  { %v224_v49 = vadd.f32 %v223_v48, %v94_v29  ;;  %259 = vadd.xlane.f32.xlu1 %v258_v47  ;;  %v241_v50 = vadd.f32 %v797_v45, %v791_v40  ;;  %v253_v52 = vmul.f32 %v797_v45, %v797_v45  ;;  %v805_v54 = vmax.f32 %v222_v46, 0.0 }
 0x113   :  { %v225_v53 = vpop.f32.mrf.mxu0 }
 0x114   :  { %v807_v55 = vmax.f32 %v224_v49, 0.0  ;;  %v226_v56 = vadd.f32 %v225_v53, %v90_v28  ;;  %242 = vadd.xlane.f32.xlu0 %v241_v50  ;;  %v261_v57 = vadd.f32 %v253_v52, %v252_v51  ;;  %v254_v0 = vmul.f32 %v805_v54, %v805_v54 }
 0x115   :  { %v227_v58 = vpop.f32.mrf.mxu0 }
 0x116   :  { %v228_v59 = vadd.f32 %v227_v58, %v94_v29  ;;  %262 = vadd.xlane.f32.xlu1 %v261_v57  ;;  %v244_v60 = vadd.f32 %v807_v55, %v805_v54  ;;  %v255_v61 = vmul.f32 %v807_v55, %v807_v55  ;;  %v813_v62 = vmax.f32 %v226_v56, 0.0 }
 0x118   :  { %v815_v63 = vmax.f32 %v228_v59, 0.0  ;;  %245 = vadd.xlane.f32.xlu0 %v244_v60  ;;  %v264_v3 = vadd.f32 %v255_v61, %v254_v0  ;;  %v256_v6 = vmul.f32 %v813_v62, %v813_v62 }
 0x11a   :  { %v247_v2 = vadd.f32 %v815_v63, %v813_v62  ;;  %v257_v4 = vmul.f32 %v815_v63, %v815_v63 }
 0x11c   :  { %248 = vadd.xlane.f32.xlu1 %v247_v2  ;;  %265 = vadd.xlane.f32.xlu0 %v264_v3  ;;  %v267_v8 = vadd.f32 %v257_v4, %v256_v6 }
 0x120   :  { %268 = vadd.xlane.f32.xlu1 %v267_v8 }
 0x199   :  { %v240_v22 = vpop.xlane.xlu0 %239 }
 0x19a   :  { %v270_v23 = vmul.f32 0.00390625, %v240_v22 }
 0x19b   :  { %v260_v24 = vpop.xlane.xlu1 %259 }
 0x19c   :  { %v274_v25 = vmul.f32 0.00390625, %v260_v24  ;;  %v278_v26 = vmul.f32 %v270_v23, %v270_v23  ;;  %v298_v61 = vsub.f32 %v785_v33, %v270_v23  ;;  %v299_v1 = vsub.f32 %v787_v36, %v270_v23 }
 0x19d   :  { %v243_v27 = vpop.xlane.xlu0 %242 }
 0x19e   :  { %v282_v28 = vsub.f32 %v274_v25, %v278_v26  ;;  %v271_v29 = vmul.f32 0.00390625, %v243_v27 }
 0x19f   :  { %v263_v30 = vpop.xlane.xlu1 %262 }
 0x1a0   :  { %v286_v31 = vmax.f32 %v282_v28, 0.0  ;;  %v275_v32 = vmul.f32 0.00390625, %v263_v30  ;;  %v279_v34 = vmul.f32 %v271_v29, %v271_v29  ;;  %v300_v0 = vsub.f32 %v791_v40, %v271_v29 }
 0x1a1   :  { %v246_v35 = vpop.xlane.xlu0 %245  ;;  %v301_v2 = vsub.f32 %v797_v45, %v271_v29 }
 0x1a2   :  { %v290_v37 = vadd.f32 1e-05, %v286_v31  ;;  %v283_v38 = vsub.f32 %v275_v32, %v279_v34  ;;  %v272_v39 = vmul.f32 0.00390625, %v246_v35 }
 0x1a4   :  { %v287_v41 = vmax.f32 %v283_v38, 0.0  ;;  %634 = vrsqrt.f32 %v290_v37  ;;  %v280_v47 = vmul.f32 %v272_v39, %v272_v39  ;;  %v302_v11 = vsub.f32 %v805_v54, %v272_v39  ;;  %v540_v54 = vld [vmem:[%s846_s4] ss:$0 sm:$0xff]  ;;  %s702_s4 = scalar_lea.vmem %s512_s13, 512 }
 0x1a5   :  { %v249_v42 = vpop.xlane.xlu1 %248  ;;  %v266_v43 = vpop.xlane.xlu0 %265  ;;  %v303_v33 = vsub.f32 %v807_v55, %v272_v39  ;;  %p703_p1 = scmp.ne.s32.totalorder %s512_s13, %s702_s4  ;;  %p708_p3 = scmp.lt.s32.totalorder %s702_s4, %s702_s4 }
 0x1a6   :  { %v291_v44 = vadd.f32 1e-05, %v287_v41  ;;  %v273_v46 = vmul.f32 0.00390625, %v249_v42  ;;  %v276_v48 = vmul.f32 0.00390625, %v266_v43 }
 0x1a7   :  { %p709_p4 = por %p708_p3, %p707_p2 }
 0x1a8   :  { %636 = vrsqrt.f32 %v291_v44  ;;  %v284_v49 = vsub.f32 %v276_v48, %v280_v47  ;;  %v281_v52 = vmul.f32 %v273_v46, %v273_v46  ;;  %v304_v40 = vsub.f32 %v813_v62, %v273_v46 }
 0x1a9   :  { %v269_v50 = vpop.xlane.xlu1 %268  ;;  %v305_v36 = vsub.f32 %v815_v63, %v273_v46  ;;  %p710_p5 = pnand %p709_p4, %p703_p1 }
 0x1aa   :  { %v288_v51 = vmax.f32 %v284_v49, 0.0  ;;  %v277_v53 = vmul.f32 0.00390625, %v269_v50 }
 0x1ac   :  { %v292_v56 = vadd.f32 1e-05, %v288_v51  ;;  %v285_v57 = vsub.f32 %v277_v53, %v281_v52 }
 0x1ae   :  { %v289_v58 = vmax.f32 %v285_v57, 0.0  ;;  %638 = vrsqrt.f32 %v292_v56 }
 0x1b0   :  { %v293_v59 = vadd.f32 1e-05, %v289_v58 }
 0x1b1   :  { %v635_v60 = vpop.eup %634 }
 0x1b2   :  { %640 = vrsqrt.f32 %v293_v59  ;;  %v307_v4 = vmul.f32 %v635_v60, %v299_v1  ;;  %v306_v6 = vmul.f32 %v635_v60, %v298_v61 }
 0x1b5   :  { %v637_v3 = vpop.eup %636 }
 0x1b6   :  { %v309_v5 = vmul.f32 %v637_v3, %v301_v2  ;;  %v308_v7 = vmul.f32 %v637_v3, %v300_v0 }
 0x1b8   :  { %v315_v8 = vpack.c.bf16 %v309_v5, %v307_v4  ;;  %v314_v9 = vpack.c.bf16 %v308_v7, %v306_v6 }
 0x1ba   :  { %485 = vmatprep.mubr.bf16.mxu1 %v315_v8 }
 0x1bb   :  { %486 = vmatmul.mubr.bf16.vlgmr.msra.gmra.mxu1 %v314_v9  ;;  %v639_v10 = vpop.eup %638 }
 0x1bc   :  { %v311_v45 = vmul.f32 %v639_v10, %v303_v33  ;;  %v310_v14 = vmul.f32 %v639_v10, %v302_v11 }
 0x1bf   :  { %v641_v12 = vpop.eup %640 }
 0x1c0   :  { %v313_v13 = vmul.f32 %v641_v12, %v305_v36  ;;  %v312_v15 = vmul.f32 %v641_v12, %v304_v40 }
 0x1c2   :  { %v317_v16 = vpack.c.bf16 %v313_v13, %v311_v45  ;;  %v316_v17 = vpack.c.bf16 %v312_v15, %v310_v14 }
 0x1c4   :  { %493 = vmatprep.mubr.bf16.mxu1 %v317_v16 }
 0x1c5   :  { %494 = vmatmul.mubr.bf16.gmra.mxu1 %v316_v17 }
 0x27b   :  { %v573_v18 = vpop.f32.mrf.mxu1 }
 0x27d   :  { %v574_v19 = vpop.f32.mrf.mxu1 }
 0x27e   :  { %v575_v55 = vadd.f32 %v574_v19, %v573_v18 }
 0x27f   :  { %v576_v20 = vpop.f32.mrf.mxu1 }
 0x280   :  { %v488_v62 = vadd.f32 %v575_v55, %v540_v54 }
 0x281   :  { %v577_v21 = vpop.f32.mrf.mxu1 }
 0x282   :  { %502 = vst [vmem:[#allocation8] sm:$0xff] %v488_v62  ;;  %v578_v63 = vadd.f32 %v577_v21, %v576_v20 }
 0x284   :  { %v491_v22 = vadd.f32 %v578_v63, %v540_v54 }
 0x285   :  { %v579_v23 = vpop.f32.mrf.mxu1 }
 0x286   :  { %503 = vst [vmem:[#allocation8 + $0x8] sm:$0xff] %v491_v22 }
 0x287   :  { %v580_v24 = vpop.f32.mrf.mxu1 }
 0x288   :  { %v581_v25 = vadd.f32 %v580_v24, %v579_v23 }
 0x289   :  { %v582_v26 = vpop.f32.mrf.mxu1 }
 0x28a   :  { %v496_v27 = vadd.f32 %v581_v25, %v540_v54 }
 0x28b   :  { %v583_v28 = vpop.f32.mrf.mxu1 }
 0x28c   :  { %504 = vst [vmem:[#allocation8 + $0x10] sm:$0xff] %v496_v27  ;;  %v584_v29 = vadd.f32 %v583_v28, %v582_v26 }
 0x28e   :  { %v499_v30 = vadd.f32 %v584_v29, %v540_v54 }
 0x290   :  { %505 = vst [vmem:[#allocation8 + $0x18] sm:$0xff] %v499_v30 }
 0x291   :  { %713 = shalt.err (!%p710_p5)
}
 0x292   :  { %517 = dma.vmem_to_hbm [thread:$0]  %s512_s13, 512, %s847_s5, [#allocation4], %s730_s23, %s730_s23, %s731_s24  }
 0x293   :  { %726 = dma.done.wait [#allocation4], 512  }
 0x294   :  { %727 = vsyncadd [#allocation4], 4294966784 }
 0x295   :  { %521 = vsyncpa [#allocation3], 1 }
 0x296   :  { %522 = vsyncpa [#allocation6], 1 }
 0x297   :  { %523 = vsyncpa [#allocation4], 1 }

// kernel: pwff_decoder_sanm_forward.1
= control target key start
LH: loop header
LB: loop body
LE: loop exit
PB: predicated region body
PF: predicated region fallthrough
CT: control target
= control target key end

     0   :  { %10 = vsyncpa [#allocation3], 0  ;;  %s842_s0 = inlined_call_operand.hbm [shape: f32[32,128], index: 0, kind: input, shape index: {}]   ;;  %s843_s1 = inlined_call_operand.hbm [shape: bf16[128,256], index: 1, kind: input, shape index: {}]   ;;  %s844_s2 = inlined_call_operand.vmem [shape: f32[1,256], index: 2, kind: input, shape index: {}]   ;;  %s845_s3 = inlined_call_operand.hbm [shape: bf16[256,128], index: 3, kind: input, shape index: {}]   ;;  %s846_s4 = inlined_call_operand.vmem [shape: f32[1,128], index: 4, kind: input, shape index: {}]   ;;  %s847_s5 = inlined_call_operand.hbm [shape: f32[32,128], index: 5, kind: output, shape index: {}]  }
   0x1   :  { %11 = vsyncpa [#allocation6], 0 }
   0x2   :  { %12 = vsyncpa [#allocation4], 0  ;;  %s728_s18 = smov [#allocation5]   ;;  %s729_s20 = smov [#allocation2]  }
   0x3   :  { %s30_s19 = sshll.u32 %s728_s18, 4  ;;  %s18_s21 = sshll.u32 %s729_s20, 4  ;;  %s31_s19 = int_to_ptr.vmem [resolvable:$true] %s30_s19  ;;  %s19_s21 = int_to_ptr.vmem [resolvable:$true] %s18_s21 }
   0x4   :  { %s650_s22 = scalar_lea.vmem %s31_s19, 2048  ;;  %p655_p1 = scmp.lt.s32.totalorder %s31_s19, %s31_s19 }
   0x5   :  { %p651_p0 = scmp.ne.s32.totalorder %s31_s19, %s650_s22  ;;  %p656_p2 = scmp.lt.s32.totalorder %s650_s22, %s650_s22 }
   0x7   :  { %p657_p3 = por %p656_p2, %p655_p1 }
   0x9   :  { %p658_p4 = pnand %p657_p3, %p651_p0 }
   0xb   :  { %661 = shalt.err (!%p658_p4)
}
   0xc   :  { %s730_s23 = smov 128   ;;  %s731_s24 = smov 8  }
   0xd   :  { %36 = dma.hbm_to_vmem [thread:$0]  %s843_s1, 2048, %s31_s19, [#allocation6], %s730_s23, %s730_s23, %s731_s24  }
   0xe   :  { %s670_s27 = scalar_lea.vmem %s19_s21, 512  ;;  %p675_p6 = scmp.lt.s32.totalorder %s19_s21, %s19_s21 }
   0xf   :  { %p671_p5 = scmp.ne.s32.totalorder %s19_s21, %s670_s27  ;;  %p676_p7 = scmp.lt.s32.totalorder %s670_s27, %s670_s27 }
  0x11   :  { %p677_p8 = por %p676_p7, %p675_p6 }
  0x13   :  { %p678_p9 = pnand %p677_p8, %p671_p5 }
  0x15   :  { %681 = shalt.err (!%p678_p9)
}
  0x16   :  { %24 = dma.hbm_to_vmem [thread:$0]  %s842_s0, 512, %s19_s21, [#allocation3], %s730_s23, %s730_s23, %s731_s24  }
  0x17   :  { %s732_s30 = smov [#allocation7]  }
  0x18   :  { %s44_s6 = sshll.u32 %s732_s30, 4  ;;  %s45_s6 = int_to_ptr.vmem [resolvable:$true] %s44_s6 }
  0x19   :  { %s690_s7 = scalar_lea.vmem %s45_s6, 2048  ;;  %p695_p11 = scmp.lt.s32.totalorder %s45_s6, %s45_s6 }
  0x1a   :  { %p691_p10 = scmp.ne.s32.totalorder %s45_s6, %s690_s7  ;;  %p696_p12 = scmp.lt.s32.totalorder %s690_s7, %s690_s7 }
  0x1c   :  { %p697_p13 = por %p696_p12, %p695_p11 }
  0x1e   :  { %p698_p0 = pnand %p697_p13, %p691_p10 }
  0x20   :  { %701 = shalt.err (!%p698_p0)
}
  0x21   :  { %s733_s1 = smov 64   ;;  %s734_s8 = smov 4  }
  0x22   :  { %50 = dma.hbm_to_vmem [thread:$0]  %s845_s3, 2048, %s45_s6, [#allocation6], %s733_s1, %s733_s1, %s734_s8  }
  0x23   :  { %722 = dma.done.wait [#allocation3], 512  }
  0x24   :  { %723 = vsyncadd [#allocation3], 4294966784 }
  0x25   :  { %724 = dma.done.wait [#allocation6], 4096  }
  0x26   :  { %725 = vsyncadd [#allocation6], 4294963200  ;;  %v735_v0 = vmov 0   ;;  %v594_v1 = vld [vmem:[#allocation5 + $0x74] ss:$8 sps:$4 sm:$0xff]   ;;  %v63_v17 = vld [vmem:[#allocation2] sm:$0xff]  ;;  %v87_v23 = vlaneseq }
  0x27   :  { %209 = vmatprep.mubr.bf16.mxu0 %v735_v0  ;;  %v596_v2 = vld [vmem:[#allocation5 + $0x70] ss:$8 sps:$4 sm:$0xff]   ;;  %177 = vmatprep.subr.bf16.mxu0 %v594_v1  ;;  %v597_v3 = vld [vmem:[#allocation5 + $0x64] ss:$8 sps:$4 sm:$0xff]   ;;  %v599_v4 = vld [vmem:[#allocation5 + $0x60] ss:$8 sps:$4 sm:$0xff]  }
  0x28   :  { %178 = vmatpush1.bf16.msra.mxu0 %v596_v2  ;;  %v600_v5 = vld [vmem:[#allocation5 + $0x54] ss:$8 sps:$4 sm:$0xff]   ;;  %v602_v6 = vld [vmem:[#allocation5 + $0x50] ss:$8 sps:$4 sm:$0xff]   ;;  %v603_v7 = vld [vmem:[#allocation5 + $0x44] ss:$8 sps:$4 sm:$0xff]  }
  0x29   :  { %179 = vmatprep.subr.bf16.mxu0 %v597_v3  ;;  %v605_v8 = vld [vmem:[#allocation5 + $0x40] ss:$8 sps:$4 sm:$0xff]   ;;  %v606_v9 = vld [vmem:[#allocation5 + $0x34] ss:$8 sps:$4 sm:$0xff]   ;;  %v608_v10 = vld [vmem:[#allocation5 + $0x30] ss:$8 sps:$4 sm:$0xff]  }
  0x2a   :  { %v609_v11 = vld [vmem:[#allocation5 + $0x24] ss:$8 sps:$4 sm:$0xff]   ;;  %v611_v12 = vld [vmem:[#allocation5 + $0x20] ss:$8 sps:$4 sm:$0xff]   ;;  %v612_v13 = vld [vmem:[#allocation5 + $0x14] ss:$8 sps:$4 sm:$0xff]  }
  0x2b   :  { %v614_v14 = vld [vmem:[#allocation5 + $0x10] ss:$8 sps:$4 sm:$0xff]   ;;  %v615_v15 = vld [vmem:[#allocation5 + $0x4] ss:$8 sps:$4 sm:$0xff]   ;;  %v617_v16 = vld [vmem:[#allocation5] ss:$8 sps:$4 sm:$0xff]  }
  0x2c   :  { %180 = vmatpush1.bf16.msra.mxu0 %v599_v4  ;;  %v64_v18 = vld [vmem:[#allocation2 + $0x8] sm:$0xff]  ;;  %v65_v20 = vld [vmem:[#allocation2 + $0x10] sm:$0xff]  ;;  %v66_v21 = vld [vmem:[#allocation2 + $0x18] sm:$0xff]  ;;  %v88_v24 = vshrl.u32 %v87_v23, 7  ;;  %s736_s12 = smov [#allocation8]  }
  0x2d   :  { %181 = vmatprep.subr.bf16.mxu0 %v600_v5  ;;  %v67_v19 = vpack.c.bf16 %v64_v18, %v63_v17  ;;  %v68_v22 = vpack.c.bf16 %v66_v21, %v65_v20  ;;  %v85_v26 = vld [vmem:[%s844_s2] sm:$0x3]  ;;  %v618_v1 = vld [vmem:[#allocation7 + $0x78] sm:$0xff]   ;;  %v629_v17 = vld [vmem:[#allocation7 + $0x10] sm:$0xff]   ;;  %s511_s13 = sshll.u32 %s736_s12, 4  ;;  %s512_s13 = int_to_ptr.vmem [resolvable:$true] %s511_s13 }
  0x2e   :  { %v89_v25 = vsub.s32 0, %v88_v24  ;;  %v93_v27 = vsub.s32 1, %v88_v24  ;;  %v619_v5 = vld [vmem:[#allocation7 + $0x38] sm:$0xff]   ;;  %557 = vmatprep.subr.bf16.mxu1 %v618_v1  ;;  %v630_v18 = vld [vmem:[#allocation7 + $0x48] sm:$0xff]   ;;  %v632_v20 = vld [vmem:[#allocation7 + $0x40] sm:$0xff]   ;;  %p707_p2 = scmp.lt.s32.totalorder %s512_s13, %s512_s13 }
  0x2f   :  { %558 = vmatpush3.bf16.msra.mxu1 %v619_v5  ;;  %v633_v21 = vld [vmem:[#allocation7] sm:$0xff]  }
  0x30   :  { %182 = vmatpush1.bf16.msra.mxu0 %v602_v6  ;;  %v90_v28 = vrot.slane %v85_v26, %v89_v25  ;;  %v94_v29 = vrot.slane %v85_v26, %v93_v27 }
  0x31   :  { %183 = vmatprep.subr.bf16.mxu0 %v603_v7  ;;  %v620_v7 = vld [vmem:[#allocation7 + $0x70] sm:$0xff]  }
  0x32   :  { %559 = vmatprep.subr.bf16.mxu1 %v620_v7 }
  0x34   :  { %184 = vmatpush1.bf16.msra.mxu0 %v605_v8 }
  0x35   :  { %185 = vmatprep.subr.bf16.mxu0 %v606_v9  ;;  %v621_v9 = vld [vmem:[#allocation7 + $0x30] sm:$0xff]  }
  0x36   :  { %560 = vmatpush3.bf16.msra.mxu1 %v621_v9 }
  0x38   :  { %186 = vmatpush1.bf16.msra.mxu0 %v608_v10  ;;  %v622_v10 = vld [vmem:[#allocation7 + $0x68] sm:$0xff]  }
  0x39   :  { %187 = vmatprep.subr.bf16.mxu0 %v609_v11  ;;  %v623_v11 = vld [vmem:[#allocation7 + $0x28] sm:$0xff]   ;;  %561 = vmatprep.subr.bf16.mxu1 %v622_v10 }
  0x3a   :  { %562 = vmatpush3.bf16.msra.mxu1 %v623_v11 }
  0x3c   :  { %188 = vmatpush1.bf16.msra.mxu0 %v611_v12  ;;  %v624_v12 = vld [vmem:[#allocation7 + $0x60] sm:$0xff]  }
  0x3d   :  { %189 = vmatprep.subr.bf16.mxu0 %v612_v13  ;;  %v625_v13 = vld [vmem:[#allocation7 + $0x20] sm:$0xff]   ;;  %563 = vmatprep.subr.bf16.mxu1 %v624_v12 }
  0x3e   :  { %564 = vmatpush3.bf16.msra.mxu1 %v625_v13 }
  0x40   :  { %190 = vmatpush1.bf16.msra.mxu0 %v614_v14  ;;  %v626_v14 = vld [vmem:[#allocation7 + $0x58] sm:$0xff]  }
  0x41   :  { %191 = vmatprep.subr.bf16.mxu0 %v615_v15  ;;  %v627_v15 = vld [vmem:[#allocation7 + $0x18] sm:$0xff]   ;;  %565 = vmatprep.subr.bf16.mxu1 %v626_v14 }
  0x42   :  { %566 = vmatpush3.bf16.msra.mxu1 %v627_v15 }
  0x44   :  { %192 = vmatpush1.bf16.msra.mxu0 %v617_v16  ;;  %v628_v16 = vld [vmem:[#allocation7 + $0x50] sm:$0xff]  }
  0x45   :  { %567 = vmatprep.subr.bf16.mxu1 %v628_v16 }
  0x46   :  { %568 = vmatpush3.bf16.msra.mxu1 %v629_v17 }
  0x47   :  { %210 = vmatmul.mubr.bf16.vlgmr.msra.gmra.mxu0 %v67_v19  ;;  %v631_v19 = vld [vmem:[#allocation7 + $0x8] sm:$0xff]   ;;  %569 = vmatprep.subr.bf16.mxu1 %v630_v18 }
  0x48   :  { %219 = vmatprep.mubr.bf16.mxu0 %v735_v0 }
  0x4a   :  { %570 = vmatpush3.bf16.msra.mxu1 %v631_v19 }
  0x4b   :  { %571 = vmatprep.subr.bf16.mxu1 %v632_v20 }
  0x4e   :  { %572 = vmatpush3.bf16.msra.mxu1 %v633_v21 }
  0x4f   :  { %220 = vmatmul.mubr.bf16.gmra.mxu0 %v68_v22 }
 0x107   :  { %v211_v30 = vpop.f32.mrf.mxu0 }
 0x108   :  { %v212_v31 = vadd.f32 %v211_v30, %v90_v28 }
 0x109   :  { %v213_v32 = vpop.f32.mrf.mxu0 }
 0x10a   :  { %v785_v33 = vmax.f32 %v212_v31, 0.0  ;;  %v214_v34 = vadd.f32 %v213_v32, %v94_v29 }
 0x10b   :  { %v215_v35 = vpop.f32.mrf.mxu0 }
 0x10c   :  { %v787_v36 = vmax.f32 %v214_v34, 0.0  ;;  %v216_v37 = vadd.f32 %v215_v35, %v90_v28  ;;  %v250_v39 = vmul.f32 %v785_v33, %v785_v33 }
 0x10d   :  { %v217_v38 = vpop.f32.mrf.mxu0 }
 0x10e   :  { %v791_v40 = vmax.f32 %v216_v37, 0.0  ;;  %v218_v41 = vadd.f32 %v217_v38, %v94_v29  ;;  %v238_v42 = vadd.f32 %v787_v36, %v785_v33  ;;  %v251_v43 = vmul.f32 %v787_v36, %v787_v36 }
 0x10f   :  { %v221_v44 = vpop.f32.mrf.mxu0 }
 0x110   :  { %v797_v45 = vmax.f32 %v218_v41, 0.0  ;;  %v222_v46 = vadd.f32 %v221_v44, %v90_v28  ;;  %239 = vadd.xlane.f32.xlu0 %v238_v42  ;;  %v258_v47 = vadd.f32 %v251_v43, %v250_v39  ;;  %v252_v51 = vmul.f32 %v791_v40, %v791_v40 }
 0x111   :  { %v223_v48 = vpop.f32.mrf.mxu0 }
 0x112   :  { %v224_v49 = vadd.f32 %v223_v48, %v94_v29  ;;  %259 = vadd.xlane.f32.xlu1 %v258_v47  ;;  %v241_v50 = vadd.f32 %v797_v45, %v791_v40  ;;  %v253_v52 = vmul.f32 %v797_v45, %v797_v45  ;;  %v805_v54 = vmax.f32 %v222_v46, 0.0 }
 0x113   :  { %v225_v53 = vpop.f32.mrf.mxu0 }
 0x114   :  { %v807_v55 = vmax.f32 %v224_v49, 0.0  ;;  %v226_v56 = vadd.f32 %v225_v53, %v90_v28  ;;  %242 = vadd.xlane.f32.xlu0 %v241_v50  ;;  %v261_v57 = vadd.f32 %v253_v52, %v252_v51  ;;  %v254_v0 = vmul.f32 %v805_v54, %v805_v54 }
 0x115   :  { %v227_v58 = vpop.f32.mrf.mxu0 }
 0x116   :  { %v228_v59 = vadd.f32 %v227_v58, %v94_v29  ;;  %262 = vadd.xlane.f32.xlu1 %v261_v57  ;;  %v244_v60 = vadd.f32 %v807_v55, %v805_v54  ;;  %v255_v61 = vmul.f32 %v807_v55, %v807_v55  ;;  %v813_v62 = vmax.f32 %v226_v56, 0.0 }
 0x118   :  { %v815_v63 = vmax.f32 %v228_v59, 0.0  ;;  %245 = vadd.xlane.f32.xlu0 %v244_v60  ;;  %v264_v3 = vadd.f32 %v255_v61, %v254_v0  ;;  %v256_v6 = vmul.f32 %v813_v62, %v813_v62 }
 0x11a   :  { %v247_v2 = vadd.f32 %v815_v63, %v813_v62  ;;  %v257_v4 = vmul.f32 %v815_v63, %v815_v63 }
 0x11c   :  { %248 = vadd.xlane.f32.xlu1 %v247_v2  ;;  %265 = vadd.xlane.f32.xlu0 %v264_v3  ;;  %v267_v8 = vadd.f32 %v257_v4, %v256_v6 }
 0x120   :  { %268 = vadd.xlane.f32.xlu1 %v267_v8 }
 0x199   :  { %v240_v22 = vpop.xlane.xlu0 %239 }
 0x19a   :  { %v270_v23 = vmul.f32 0.00390625, %v240_v22 }
 0x19b   :  { %v260_v24 = vpop.xlane.xlu1 %259 }
 0x19c   :  { %v274_v25 = vmul.f32 0.00390625, %v260_v24  ;;  %v278_v26 = vmul.f32 %v270_v23, %v270_v23  ;;  %v298_v61 = vsub.f32 %v785_v33, %v270_v23  ;;  %v299_v1 = vsub.f32 %v787_v36, %v270_v23 }
 0x19d   :  { %v243_v27 = vpop.xlane.xlu0 %242 }
 0x19e   :  { %v282_v28 = vsub.f32 %v274_v25, %v278_v26  ;;  %v271_v29 = vmul.f32 0.00390625, %v243_v27 }
 0x19f   :  { %v263_v30 = vpop.xlane.xlu1 %262 }
 0x1a0   :  { %v286_v31 = vmax.f32 %v282_v28, 0.0  ;;  %v275_v32 = vmul.f32 0.00390625, %v263_v30  ;;  %v279_v34 = vmul.f32 %v271_v29, %v271_v29  ;;  %v300_v0 = vsub.f32 %v791_v40, %v271_v29 }
 0x1a1   :  { %v246_v35 = vpop.xlane.xlu0 %245  ;;  %v301_v2 = vsub.f32 %v797_v45, %v271_v29 }
 0x1a2   :  { %v290_v37 = vadd.f32 1e-05, %v286_v31  ;;  %v283_v38 = vsub.f32 %v275_v32, %v279_v34  ;;  %v272_v39 = vmul.f32 0.00390625, %v246_v35 }
 0x1a4   :  { %v287_v41 = vmax.f32 %v283_v38, 0.0  ;;  %634 = vrsqrt.f32 %v290_v37  ;;  %v280_v47 = vmul.f32 %v272_v39, %v272_v39  ;;  %v302_v11 = vsub.f32 %v805_v54, %v272_v39  ;;  %v540_v54 = vld [vmem:[%s846_s4] ss:$0 sm:$0xff]  ;;  %s702_s4 = scalar_lea.vmem %s512_s13, 512 }
 0x1a5   :  { %v249_v42 = vpop.xlane.xlu1 %248  ;;  %v266_v43 = vpop.xlane.xlu0 %265  ;;  %v303_v33 = vsub.f32 %v807_v55, %v272_v39  ;;  %p703_p1 = scmp.ne.s32.totalorder %s512_s13, %s702_s4  ;;  %p708_p3 = scmp.lt.s32.totalorder %s702_s4, %s702_s4 }
 0x1a6   :  { %v291_v44 = vadd.f32 1e-05, %v287_v41  ;;  %v273_v46 = vmul.f32 0.00390625, %v249_v42  ;;  %v276_v48 = vmul.f32 0.00390625, %v266_v43 }
 0x1a7   :  { %p709_p4 = por %p708_p3, %p707_p2 }
 0x1a8   :  { %636 = vrsqrt.f32 %v291_v44  ;;  %v284_v49 = vsub.f32 %v276_v48, %v280_v47  ;;  %v281_v52 = vmul.f32 %v273_v46, %v273_v46  ;;  %v304_v40 = vsub.f32 %v813_v62, %v273_v46 }
 0x1a9   :  { %v269_v50 = vpop.xlane.xlu1 %268  ;;  %v305_v36 = vsub.f32 %v815_v63, %v273_v46  ;;  %p710_p5 = pnand %p709_p4, %p703_p1 }
 0x1aa   :  { %v288_v51 = vmax.f32 %v284_v49, 0.0  ;;  %v277_v53 = vmul.f32 0.00390625, %v269_v50 }
 0x1ac   :  { %v292_v56 = vadd.f32 1e-05, %v288_v51  ;;  %v285_v57 = vsub.f32 %v277_v53, %v281_v52 }
 0x1ae   :  { %v289_v58 = vmax.f32 %v285_v57, 0.0  ;;  %638 = vrsqrt.f32 %v292_v56 }
 0x1b0   :  { %v293_v59 = vadd.f32 1e-05, %v289_v58 }
 0x1b1   :  { %v635_v60 = vpop.eup %634 }
 0x1b2   :  { %640 = vrsqrt.f32 %v293_v59  ;;  %v307_v4 = vmul.f32 %v635_v60, %v299_v1  ;;  %v306_v6 = vmul.f32 %v635_v60, %v298_v61 }
 0x1b5   :  { %v637_v3 = vpop.eup %636 }
 0x1b6   :  { %v309_v5 = vmul.f32 %v637_v3, %v301_v2  ;;  %v308_v7 = vmul.f32 %v637_v3, %v300_v0 }
 0x1b8   :  { %v315_v8 = vpack.c.bf16 %v309_v5, %v307_v4  ;;  %v314_v9 = vpack.c.bf16 %v308_v7, %v306_v6 }
 0x1ba   :  { %485 = vmatprep.mubr.bf16.mxu1 %v315_v8 }
 0x1bb   :  { %486 = vmatmul.mubr.bf16.vlgmr.msra.gmra.mxu1 %v314_v9  ;;  %v639_v10 = vpop.eup %638 }
 0x1bc   :  { %v311_v45 = vmul.f32 %v639_v10, %v303_v33  ;;  %v310_v14 = vmul.f32 %v639_v10, %v302_v11 }
 0x1bf   :  { %v641_v12 = vpop.eup %640 }
 0x1c0   :  { %v313_v13 = vmul.f32 %v641_v12, %v305_v36  ;;  %v312_v15 = vmul.f32 %v641_v12, %v304_v40 }
 0x1c2   :  { %v317_v16 = vpack.c.bf16 %v313_v13, %v311_v45  ;;  %v316_v17 = vpack.c.bf16 %v312_v15, %v310_v14 }
 0x1c4   :  { %493 = vmatprep.mubr.bf16.mxu1 %v317_v16 }
 0x1c5   :  { %494 = vmatmul.mubr.bf16.gmra.mxu1 %v316_v17 }
 0x27b   :  { %v573_v18 = vpop.f32.mrf.mxu1 }
 0x27d   :  { %v574_v19 = vpop.f32.mrf.mxu1 }
 0x27e   :  { %v575_v55 = vadd.f32 %v574_v19, %v573_v18 }
 0x27f   :  { %v576_v20 = vpop.f32.mrf.mxu1 }
 0x280   :  { %v488_v62 = vadd.f32 %v575_v55, %v540_v54 }
 0x281   :  { %v577_v21 = vpop.f32.mrf.mxu1 }
 0x282   :  { %502 = vst [vmem:[#allocation8] sm:$0xff] %v488_v62  ;;  %v578_v63 = vadd.f32 %v577_v21, %v576_v20 }
 0x284   :  { %v491_v22 = vadd.f32 %v578_v63, %v540_v54 }
 0x285   :  { %v579_v23 = vpop.f32.mrf.mxu1 }
 0x286   :  { %503 = vst [vmem:[#allocation8 + $0x8] sm:$0xff] %v491_v22 }
 0x287   :  { %v580_v24 = vpop.f32.mrf.mxu1 }
 0x288   :  { %v581_v25 = vadd.f32 %v580_v24, %v579_v23 }
 0x289   :  { %v582_v26 = vpop.f32.mrf.mxu1 }
 0x28a   :  { %v496_v27 = vadd.f32 %v581_v25, %v540_v54 }
 0x28b   :  { %v583_v28 = vpop.f32.mrf.mxu1 }
 0x28c   :  { %504 = vst [vmem:[#allocation8 + $0x10] sm:$0xff] %v496_v27  ;;  %v584_v29 = vadd.f32 %v583_v28, %v582_v26 }
 0x28e   :  { %v499_v30 = vadd.f32 %v584_v29, %v540_v54 }
 0x290   :  { %505 = vst [vmem:[#allocation8 + $0x18] sm:$0xff] %v499_v30 }
 0x291   :  { %713 = shalt.err (!%p710_p5)
}
 0x292   :  { %517 = dma.vmem_to_hbm [thread:$0]  %s512_s13, 512, %s847_s5, [#allocation4], %s730_s23, %s730_s23, %s731_s24  }
 0x293   :  { %726 = dma.done.wait [#allocation4], 512  }
 0x294   :  { %727 = vsyncadd [#allocation4], 4294966784 }
 0x295   :  { %521 = vsyncpa [#allocation3], 1 }
 0x296   :  { %522 = vsyncpa [#allocation6], 1 }
 0x297   :  { %523 = vsyncpa [#allocation4], 1 }

</bundles_post_ra>
